<compile_context>
chip_gen: v5e
topology: v5e:2x2
jax: 0.10.0
libtpu: 0.0.40
codegen_flags: <defaults>
</compile_context>

<pallas_src>
import math
from functools import partial

import jax
import jax.numpy as jnp
from jax.experimental import pallas as pl
from jax.experimental.pallas import tpu as pltpu


_VMEM_LIMIT = 32 * 1024 * 1024   # explicit scoped-VMEM request (safe on v5e/v6e/v7x)
_VMEM_BUDGET = 26 * 1024 * 1024  # planning budget used when picking tile sizes


# ----------------------------------------------------------------------------
# Pallas kernels
# ----------------------------------------------------------------------------
def _mm_act_kernel(x_ref, w_ref, s_ref, b_ref, a_ref, o_ref):
    """o = prelu((x @ w) * s + b, a); w/s/b/a stay resident in VMEM across the grid."""
    y = jnp.dot(x_ref[...], w_ref[...], preferred_element_type=jnp.float32)
    y = y * s_ref[...] + b_ref[...]
    o_ref[...] = jnp.where(y >= 0, y, y * a_ref[...]).astype(o_ref.dtype)


def _mm_res_kernel(x_ref, w_ref, s_ref, b_ref, r_ref, o_ref):
    """o = (x @ w) * s + b + r   (conv + folded output-BN + fused residual add)."""
    y = jnp.dot(x_ref[...], w_ref[...], preferred_element_type=jnp.float32)
    y = y * s_ref[...] + b_ref[...] + r_ref[...].astype(jnp.float32)
    o_ref[...] = y.astype(o_ref.dtype)


def _mm_stream_kernel(x_ref, w_ref, s_ref, b_ref, o_ref, acc_ref):
    """K-tiled streaming matmul with f32 accumulator (weight too large for VMEM)."""
    k = pl.program_id(2)

    @pl.when(k == 0)
    def _():
        acc_ref[...] = jnp.zeros_like(acc_ref)

    acc_ref[...] += jnp.dot(x_ref[...], w_ref[...],
                            preferred_element_type=jnp.float32)

    @pl.when(k == pl.num_programs(2) - 1)
    def _():
        o_ref[...] = (acc_ref[...] * s_ref[...] + b_ref[...]).astype(o_ref.dtype)


def _l2_norm_kernel(x_ref, o_ref):
    x = x_ref[...]
    nrm = jnp.sqrt(jnp.sum(x * x, axis=-1, keepdims=True))
    o_ref[...] = x / nrm


# ----------------------------------------------------------------------------
# Tiling helpers
# ----------------------------------------------------------------------------
def _vmem_est(tm, k, n, extra_cols):
    # f32 bytes for double-buffered blocks: x (tm,k), w (k,n), out (tm,n),
    # optional residual (tm,extra_cols), plus the per-column vectors.
    return 8 * (tm * k + k * n + tm * n + tm * extra_cols + 4 * n)


def _choose_tm(m, k, n, extra_cols):
    cands = ([m] if m <= 1024 else []) + [t for t in (1024, 512, 256, 128) if t < m]
    for tm in cands:
        if _vmem_est(tm, k, n, extra_cols) <= _VMEM_BUDGET:
            return tm
    return cands[-1]


def _choose_tk(k, cap=2048):
    """Largest lane-aligned (multiple of 128) divisor of K that is <= cap."""
    best = None
    t = 128
    while t <= cap:
        if k % t == 0:
            best = t
        t += 128
    assert best is not None, f"K={k} has no lane-aligned (multiple of 128) divisor"
    return best


# ----------------------------------------------------------------------------
# Pallas wrappers
# ----------------------------------------------------------------------------
def _matmul_streaming(x, w, s2, b2):
    """K-tiled path: weight is streamed from HBM once, accumulated in VMEM f32."""
    m, k = x.shape
    n = w.shape[1]
    assert n <= 1024
    tm = m if m <= 512 else 512
    tk = _choose_tk(k)
    grid = (pl.cdiv(m, tm), 1, k // tk)
    return pl.pallas_call(
        _mm_stream_kernel,
        out_shape=jax.ShapeDtypeStruct((m, n), x.dtype),
        grid=grid,
        in_specs=[pl.BlockSpec((tm, tk), lambda i, j, kk: (i, kk)),
                  pl.BlockSpec((tk, n), lambda i, j, kk: (kk, j)),
                  pl.BlockSpec((1, n), lambda i, j, kk: (0, j)),
                  pl.BlockSpec((1, n), lambda i, j, kk: (0, j))],
        out_specs=pl.BlockSpec((tm, n), lambda i, j, kk: (i, j)),
        scratch_shapes=[pltpu.VMEM((tm, n), jnp.float32)],
        compiler_params=pltpu.CompilerParams(
            dimension_semantics=("parallel", "parallel", "arbitrary"),
            vmem_limit_bytes=_VMEM_LIMIT),
    )(x, w, s2, b2)


def matmul_fused(x, w, scale, bias, *, alpha=None, residual=None):
    """y[M,N] = epilogue(x[M,K] @ w[K,N]) on the MXU.

    epilogue: per-column scale/bias (folded BatchNorm / Linear bias), then either a
    per-column PReLU (alpha) or a fused residual add.
    """
    m, k = x.shape
    k2, n = w.shape
    assert k == k2
    s2 = scale.reshape(1, n).astype(jnp.float32)
    b2 = bias.reshape(1, n).astype(jnp.float32)
    extra = n if residual is not None else 0

    # Dispatch: if the whole weight cannot be held resident in VMEM (the final Linear),
    # fall back to the K-tiled streaming kernel (plain affine epilogue only).
    min_tm = m if m <= 128 else 128
    if residual is None and alpha is None and _vmem_est(min_tm, k, n, extra) > _VMEM_BUDGET:
        return _matmul_streaming(x, w, s2, b2)

    tm = _choose_tm(m, k, n, extra)
    grid = (pl.cdiv(m, tm),)
    x_spec = pl.BlockSpec((tm, k), lambda i: (i, 0))
    w_spec = pl.BlockSpec((k, n), lambda i: (0, 0))     # constant index -> DMA'd once
    v_spec = pl.BlockSpec((1, n), lambda i: (0, 0))     # scale/bias/alpha resident
    o_spec = pl.BlockSpec((tm, n), lambda i: (i, 0))
    cparams = pltpu.CompilerParams(dimension_semantics=("parallel",),
                                   vmem_limit_bytes=_VMEM_LIMIT)

    if residual is not None:
        return pl.pallas_call(
            _mm_res_kernel,
            out_shape=jax.ShapeDtypeStruct((m, n), x.dtype),
            grid=grid,
            in_specs=[x_spec, w_spec, v_spec, v_spec, o_spec],
            out_specs=o_spec,
            compiler_params=cparams,
        )(x, w, s2, b2, residual)

    a = jnp.ones((n,), jnp.float32) if alpha is None else alpha
    a2 = a.reshape(1, n).astype(jnp.float32)
    return pl.pallas_call(
        _mm_act_kernel,
        out_shape=jax.ShapeDtypeStruct((m, n), x.dtype),
        grid=grid,
        in_specs=[x_spec, w_spec, v_spec, v_spec, v_spec],
        out_specs=o_spec,
        compiler_params=cparams,
    )(x, w, s2, b2, a2)


def l2_normalize(x):
    """Row-wise L2 normalization (torch l2_norm, axis=1)."""
    b, d = x.shape
    return pl.pallas_call(
        _l2_norm_kernel,
        out_shape=jax.ShapeDtypeStruct((b, d), x.dtype),
        grid=(1,),
        in_specs=[pl.BlockSpec((b, d), lambda i: (0, 0))],
        out_specs=pl.BlockSpec((b, d), lambda i: (0, 0)),
    )(x)


def conv3x3(x, w, scale, bias, *, stride=1, alpha=None, residual=None, pad_value=None):
    """3x3 conv (pad=1) as im2col (JAX data-movement glue) + fused Pallas matmul.

    x: [N,H,W,Cin] NHWC; w: [3,3,Cin,Cout]. `pad_value` (per input channel) lets a
    preceding inference BatchNorm be folded exactly into the conv weights.
    """
    n, h, wdim, cin = x.shape
    cout = w.shape[-1]
    ho = (h - 1) // stride + 1
    wo = (wdim - 1) // stride + 1
    if pad_value is None:
        xpad = jnp.pad(x, ((0, 0), (1, 1), (1, 1), (0, 0)))
    else:
        v = pad_value.reshape(1, 1, 1, cin).astype(x.dtype)
        xpad = jnp.pad(x - v, ((0, 0), (1, 1), (1, 1), (0, 0))) + v
    cols = []
    for dy in range(3):
        for dx in range(3):
            cols.append(xpad[:, dy:dy + stride * (ho - 1) + 1:stride,
                             dx:dx + stride * (wo - 1) + 1:stride, :])
    patches = jnp.stack(cols, axis=3).reshape(n * ho * wo, 9 * cin)
    w2 = w.reshape(9 * cin, cout)
    r2 = None if residual is None else residual.reshape(n * ho * wo, cout)
    y = matmul_fused(patches, w2, scale, bias, alpha=alpha, residual=r2)
    return y.reshape(n, ho, wo, cout)


def conv1x1(x, w, scale, bias, *, stride=1):
    """1x1 strided conv (shortcut projection) + folded BatchNorm."""
    xs = x[:, ::stride, ::stride, :]
    n, ho, wo, cin = xs.shape
    y = matmul_fused(xs.reshape(n * ho * wo, cin), w, scale, bias)
    return y.reshape(n, ho, wo, w.shape[-1])


# ----------------------------------------------------------------------------
# BatchNorm folding helpers
# ----------------------------------------------------------------------------
def _bn_fold(gamma, beta, mean, var, eps=1e-5):
    s = gamma / jnp.sqrt(var + eps)
    return s, beta - mean * s


def _identity_bn(c):
    # Freshly-initialized torch BatchNorm at eval: gamma=1, beta=0, mean=0, var=1.
    return _bn_fold(jnp.ones((c,), jnp.float32), jnp.zeros((c,), jnp.float32),
                    jnp.zeros((c,), jnp.float32), jnp.ones((c,), jnp.float32))


def _fold_bn_into_conv_input(w, s_in, b_in):
    """Fold a preceding per-input-channel affine (inference BN) into a 3x3 conv.

    conv(pad0(s*x + b), w) == conv(pad_v(x), w * s) + sum_{k,cin} w*b,  with v = -b/s.
    Exact when s != 0 (always true for folded BN with nonzero gamma).
    """
    # TODO(synk): fold is undefined for gamma == 0 channels (never the case here).
    w_eff = w * s_in[None, None, :, None]
    bias_out = jnp.einsum('hwio,i->o', w, b_in)
    safe = jnp.where(jnp.abs(s_in) > 1e-12, s_in, 1.0)
    pad_v = jnp.where(jnp.abs(s_in) > 1e-12, -b_in / safe, 0.0)
    return w_eff, bias_out, pad_v


# ----------------------------------------------------------------------------
# Backbone parameters (fresh-module initialization, NHWC weight layout)
# ----------------------------------------------------------------------------
def _get_blocks(num_layers):
    if num_layers == 50:
        cfg = [(64, 64, 3), (64, 128, 4), (128, 256, 14), (256, 512, 3)]
    elif num_layers == 100:
        cfg = [(64, 64, 3), (64, 128, 13), (128, 256, 30), (256, 512, 3)]
    elif num_layers == 152:
        cfg = [(64, 64, 3), (64, 128, 8), (128, 256, 36), (256, 512, 3)]
    else:
        raise ValueError("num_layers must be 50, 100 or 152")
    blocks = []
    for in_ch, depth, num_units in cfg:
        blocks.append((in_ch, depth, 2))
        for _ in range(num_units - 1):
            blocks.append((depth, depth, 1))
    return blocks


def make_backbone_params(key, *, input_size=112, num_layers=50, mode="ir",
                         drop_ratio=0.4, affine=True):
    assert input_size in (112, 224), "input_size should be 112 or 224"
    assert num_layers in (50, 100, 152), "num_layers should be 50, 100 or 152"
    assert mode == "ir"  # TODO(synk): mode='ir_se' (SEModule branch) not implemented.
    del drop_ratio, affine  # inference: Dropout is identity; BN1d default running stats.

    def conv_w(kk, kh, kw, cin, cout):
        std = math.sqrt(2.0 / (kh * kw * cin))
        return std * jax.random.normal(kk, (kh, kw, cin, cout), jnp.float32)

    block_defs = _get_blocks(num_layers)
    keys = iter(jax.random.split(key, 4 * len(block_defs) + 8))

    params = {}
    s, b = _identity_bn(64)
    params["input"] = dict(w=conv_w(next(keys), 3, 3, 3, 64), bn_s=s, bn_b=b,
                           prelu=0.25 * jnp.ones((64,), jnp.float32))

    body, cfg = [], []
    for in_ch, depth, stride in block_defs:
        bn1_s, bn1_b = _identity_bn(in_ch)
        w1 = conv_w(next(keys), 3, 3, in_ch, depth)
        # Fold the block's leading BatchNorm2d into conv1 (exact).
        w1_eff, bias1, pad_v = _fold_bn_into_conv_input(w1, bn1_s, bn1_b)
        bn2_s, bn2_b = _identity_bn(depth)
        blk = dict(conv1_w=w1_eff,
                   conv1_s=jnp.ones((depth,), jnp.float32),
                   conv1_b=bias1,
                   pad_v=pad_v,
                   prelu=0.25 * jnp.ones((depth,), jnp.float32),
                   conv2_w=conv_w(next(keys), 3, 3, depth, depth),
                   bn2_s=bn2_s, bn2_b=bn2_b)
        has_sc = in_ch != depth
        if has_sc:
            sc_s, sc_b = _identity_bn(depth)
            blk["sc_w"] = conv_w(next(keys), 1, 1, in_ch, depth).reshape(in_ch, depth)
            blk["sc_s"] = sc_s
            blk["sc_b"] = sc_b
        body.append(blk)
        cfg.append((stride, has_sc))
    params["body"] = body

    feat = 7 if input_size == 112 else 14
    k_lin = feat * feat * 512
    # Linear weight stored in NHWC-flatten order (fixed permutation of torch layout).
    lw = math.sqrt(1.0 / k_lin) * jax.random.normal(next(keys), (k_lin, 512), jnp.float32)
    lb = jnp.zeros((512,), jnp.float32)
    # Fold the output-layer BatchNorm2d (per-channel, channel-fastest flatten order)
    # into the Linear weight/bias, and the trailing BatchNorm1d into the epilogue.
    s2d, b2d = _identity_bn(512)
    s_rep = jnp.tile(s2d, feat * feat)
    b_rep = jnp.tile(b2d, feat * feat)
    lin_w_eff = lw * s_rep[:, None]
    lin_c = lb + b_rep @ lw
    s1d, b1d = _identity_bn(512)
    params["output"] = dict(lin_w=lin_w_eff, lin_scale=s1d,
                            lin_bias=lin_c * s1d + b1d)
    return tuple(cfg), params


# ----------------------------------------------------------------------------
# Backbone forward (single jit, static per-block config)
# ----------------------------------------------------------------------------
def bottleneck_ir(x, p, stride, has_shortcut):
    if has_shortcut:
        sc = conv1x1(x, p["sc_w"], p["sc_s"], p["sc_b"], stride=stride)
    else:
        # MaxPool2d(kernel_size=1, stride) == strided subsampling (data movement only).
        sc = x if stride == 1 else x[:, ::stride, ::stride, :]
    # res branch: (BN folded into conv1) -> Conv3x3 -> PReLU -> Conv3x3(stride) -> BN, + sc
    h = conv3x3(x, p["conv1_w"], p["conv1_s"], p["conv1_b"], stride=1,
                alpha=p["prelu"], pad_value=p["pad_v"])
    return conv3x3(h, p["conv2_w"], p["bn2_s"], p["bn2_b"], stride=stride,
                   residual=sc)


@partial(jax.jit, static_argnums=(0,))
def backbone_forward(cfg, params, x_nchw):
    """Inference forward of Backbone (mode='ir'); input is NCHW like the torch module."""
    x = jnp.transpose(x_nchw, (0, 2, 3, 1))          # NCHW -> NHWC (channels on lanes)
    p = params["input"]
    x = conv3x3(x, p["w"], p["bn_s"], p["bn_b"], stride=1, alpha=p["prelu"])
    for (stride, has_sc), blk in zip(cfg, params["body"]):
        x = bottleneck_ir(x, blk, stride, has_sc)
    p = params["output"]
    # output layer: BN2d folded into the Linear, Dropout is identity at inference,
    # Linear bias + BatchNorm1d folded into the matmul epilogue.
    # TODO(synk): training-mode Dropout / batch-stat BatchNorm not implemented.
    flat = x.reshape(x.shape[0], -1)                 # NHWC flatten
    y = matmul_fused(flat, p["lin_w"], p["lin_scale"], p["lin_bias"])
    return l2_normalize(y)


# ----------------------------------------------------------------------------
# Pure-JAX reference for the fused conv kernel (used for small unit checks)
# ----------------------------------------------------------------------------
def _conv3x3_ref(x, w, scale, bias, *, stride=1, alpha=None, residual=None):
    y = jax.lax.conv_general_dilated(
        x, w, (stride, stride), ((1, 1), (1, 1)),
        dimension_numbers=("NHWC", "HWIO", "NHWC"),
        precision=jax.lax.Precision.HIGHEST)
    y = y * scale + bias
    if alpha is not None:
        y = jnp.where(y >= 0, y, y * alpha)
    if residual is not None:
        y = y + residual
    return y


# ----------------------------------------------------------------------------
# Demo / self-test
# ----------------------------------------------------------------------------
if __name__ == "__main__":
    root = jax.random.PRNGKey(0)
    k_params, k_x, k_chk, k_w, k_r = jax.random.split(root, 5)

    # --- small unit checks of the fused conv kernel against an XLA reference ---
    xc = jax.random.normal(k_chk, (1, 8, 8, 16), jnp.float32)
    wc = 0.2 * jax.random.normal(k_w, (3, 3, 16, 32), jnp.float32)
    sc = jnp.linspace(0.5, 1.5, 32).astype(jnp.float32)
    bc = jnp.linspace(-0.2, 0.2, 32).astype(jnp.float32)
    ac = 0.25 * jnp.ones((32,), jnp.float32)

    got = conv3x3(xc, wc, sc, bc, stride=2, alpha=ac)
    ref = _conv3x3_ref(xc, wc, sc, bc, stride=2, alpha=ac)
    assert jnp.allclose(got, ref, atol=2e-2, rtol=2e-2), "conv3x3 + PReLU mismatch"

    rc = jax.random.normal(k_r, (1, 4, 4, 32), jnp.float32)
    got = conv3x3(xc, wc, sc, bc, stride=2, residual=rc)
    ref = _conv3x3_ref(xc, wc, sc, bc, stride=2, residual=rc)
    assert jnp.allclose(got, ref, atol=2e-2, rtol=2e-2), "conv3x3 + residual mismatch"

    # folded input-BN path (BN -> Conv3x3 -> PReLU) vs explicit reference
    s_in = jnp.linspace(0.8, 1.2, 16).astype(jnp.float32)
    b_in = jnp.linspace(-0.3, 0.3, 16).astype(jnp.float32)
    w_eff, bias_fold, pad_v = _fold_bn_into_conv_input(wc, s_in, b_in)
    got = conv3x3(xc, w_eff, jnp.ones((32,), jnp.float32), bias_fold,
                  stride=1, alpha=ac, pad_value=pad_v)
    ref = _conv3x3_ref(xc * s_in + b_in, wc, jnp.ones((32,), jnp.float32),
                       jnp.zeros((32,), jnp.float32), stride=1, alpha=ac)
    assert jnp.allclose(got, ref, atol=2e-2, rtol=2e-2), "BN-fold conv3x3 mismatch"

    # --- full Backbone forward: IR-50, 112x112, mode='ir', inference ---
    cfg, params = make_backbone_params(k_params, input_size=112, num_layers=50, mode="ir")
    x = jax.random.normal(k_x, (2, 3, 112, 112), jnp.float32)
    out = jax.block_until_ready(backbone_forward(cfg, params, x))

    assert out.shape == (2, 512)
    assert bool(jnp.all(jnp.isfinite(out)))
    norms = jnp.sqrt(jnp.sum(out * out, axis=1))
    assert jnp.allclose(norms, 1.0, atol=1e-4), "l2_norm output is not unit-norm"
    print("KERNEL_OK")
</pallas_src>

<mosaic_0001>
module attributes {stable_mosaic.version = 11 : i64} {
  func.func @_mm_act_kernel(%arg0: i32, %arg1: memref<16x144xf32, #tpu.memory_space<vmem>>, %arg2: memref<144x32xf32, #tpu.memory_space<vmem>>, %arg3: memref<1x32xf32, #tpu.memory_space<vmem>>, %arg4: memref<1x32xf32, #tpu.memory_space<vmem>>, %arg5: memref<1x32xf32, #tpu.memory_space<vmem>>, %arg6: memref<16x32xf32, #tpu.memory_space<vmem>>) attributes {dimension_semantics = [#tpu.dimension_semantics<parallel>], iteration_bounds = array<i64: 1>, scalar_prefetch = 0 : i64, scratch_operands = 0 : i64, tpu.core_type = #tpu.core_type<tc>, window_params = [{transform_indices = @transform_0, window_bounds = array<i64: 16, 144>}, {pipeline_mode = #tpu.pipeline_mode<synchronous>, transform_indices = @transform_1, window_bounds = array<i64: 144, 32>}, {pipeline_mode = #tpu.pipeline_mode<synchronous>, transform_indices = @transform_2, window_bounds = array<i64: 1, 32>}, {pipeline_mode = #tpu.pipeline_mode<synchronous>, transform_indices = @transform_3, window_bounds = array<i64: 1, 32>}, {pipeline_mode = #tpu.pipeline_mode<synchronous>, transform_indices = @transform_4, window_bounds = array<i64: 1, 32>}, {transform_indices = @transform_5, window_bounds = array<i64: 16, 32>}]} {
    %c0 = arith.constant 0 : index
    %c0_0 = arith.constant 0 : index
    %0 = vector.load %arg1[%c0, %c0_0] : memref<16x144xf32, #tpu.memory_space<vmem>>, vector<16x144xf32>
    %c0_1 = arith.constant 0 : index
    %c0_2 = arith.constant 0 : index
    %1 = vector.load %arg2[%c0_1, %c0_2] : memref<144x32xf32, #tpu.memory_space<vmem>>, vector<144x32xf32>
    %cst = arith.constant dense<0.000000e+00> : vector<16x32xf32>
    %2 = tpu.matmul %0, %1, %cst {dimension_numbers = #tpu.dot_dimension_numbers<[1], [0], [0], [1], [0, 0, 1, 1], [], []>} : vector<16x144xf32>, vector<144x32xf32>, vector<16x32xf32> -> vector<16x32xf32>
    %c0_3 = arith.constant 0 : index
    %c0_4 = arith.constant 0 : index
    %3 = vector.load %arg3[%c0_3, %c0_4] : memref<1x32xf32, #tpu.memory_space<vmem>>, vector<1x32xf32>
    %4 = vector.broadcast %3 : vector<1x32xf32> to vector<16x32xf32>
    %5 = arith.mulf %2, %4 : vector<16x32xf32>
    %c0_5 = arith.constant 0 : index
    %c0_6 = arith.constant 0 : index
    %6 = vector.load %arg4[%c0_5, %c0_6] : memref<1x32xf32, #tpu.memory_space<vmem>>, vector<1x32xf32>
    %7 = vector.broadcast %6 : vector<1x32xf32> to vector<16x32xf32>
    %8 = arith.addf %5, %7 : vector<16x32xf32>
    %cst_7 = arith.constant 0.000000e+00 : f32
    %9 = vector.broadcast %cst_7 : f32 to vector<16x32xf32>
    %10 = arith.cmpf oge, %8, %9 : vector<16x32xf32>
    %c0_8 = arith.constant 0 : index
    %c0_9 = arith.constant 0 : index
    %11 = vector.load %arg5[%c0_8, %c0_9] : memref<1x32xf32, #tpu.memory_space<vmem>>, vector<1x32xf32>
    %12 = vector.broadcast %11 : vector<1x32xf32> to vector<16x32xf32>
    %13 = arith.mulf %8, %12 : vector<16x32xf32>
    %14 = arith.select %10, %8, %13 : vector<16x32xi1>, vector<16x32xf32>
    %c0_10 = arith.constant 0 : index
    %c0_11 = arith.constant 0 : index
    %15 = vector.load %arg6[%c0_10, %c0_11] : memref<16x32xf32, #tpu.memory_space<vmem>>, vector<16x32xf32>
    tpu.vector_store %arg6[%c0_10, %c0_11], %14 {strides = array<i32>} : memref<16x32xf32, #tpu.memory_space<vmem>>, vector<16x32xf32>,
    return
  }
  func.func @transform_0(%arg0: i32) -> (i32, i32) {
    %c0_i32 = arith.constant 0 : i32
    %c0_i32_0 = arith.constant 0 : i32
    return %arg0, %c0_i32 : i32, i32
  }
  func.func @transform_1(%arg0: i32) -> (i32, i32) {
    %c0_i32 = arith.constant 0 : i32
    %c0_i32_0 = arith.constant 0 : i32
    %c0_i32_1 = arith.constant 0 : i32
    return %c0_i32, %c0_i32_0 : i32, i32
  }
  func.func @transform_2(%arg0: i32) -> (i32, i32) {
    %c0_i32 = arith.constant 0 : i32
    %c0_i32_0 = arith.constant 0 : i32
    %c0_i32_1 = arith.constant 0 : i32
    return %c0_i32, %c0_i32_0 : i32, i32
  }
  func.func @transform_3(%arg0: i32) -> (i32, i32) {
    %c0_i32 = arith.constant 0 : i32
    %c0_i32_0 = arith.constant 0 : i32
    %c0_i32_1 = arith.constant 0 : i32
    return %c0_i32, %c0_i32_0 : i32, i32
  }
  func.func @transform_4(%arg0: i32) -> (i32, i32) {
    %c0_i32 = arith.constant 0 : i32
    %c0_i32_0 = arith.constant 0 : i32
    %c0_i32_1 = arith.constant 0 : i32
    return %c0_i32, %c0_i32_0 : i32, i32
  }
  func.func @transform_5(%arg0: i32) -> (i32, i32) {
    %c0_i32 = arith.constant 0 : i32
    %c0_i32_0 = arith.constant 0 : i32
    return %arg0, %c0_i32 : i32, i32
  }
}

</mosaic_0001>

<bundles_post_ra>
// kernel: tpu_custom_call.1
= control target key start
LH: loop header
LB: loop body
LE: loop exit
PB: predicated region body
PF: predicated region fallthrough
CT: control target
= control target key end

     0   :  { %vm43_vm0 = vcmask 130048   ;;  %s302_s0 = inlined_call_operand.vmem [shape: f32[16,144], index: 0, kind: input, shape index: {}]   ;;  %s303_s1 = inlined_call_operand.vmem [shape: f32[144,32], index: 1, kind: input, shape index: {}]   ;;  %s304_s2 = inlined_call_operand.vmem [shape: f32[1,32], index: 2, kind: input, shape index: {}]   ;;  %s305_s3 = inlined_call_operand.vmem [shape: f32[1,32], index: 3, kind: input, shape index: {}]   ;;  %s306_s4 = inlined_call_operand.vmem [shape: f32[1,32], index: 4, kind: input, shape index: {}]   ;;  %s307_s5 = inlined_call_operand.hbm [shape: f32[16,32], index: 5, kind: output, shape index: {}]  }
   0x1   :  { %v40_v0 = vld [vmem:[%s303_s1 + $0x78] sm:$0xff]  ;;  %v39_v1 = vld [vmem:[%s303_s1 + $0x70] sm:$0xff]  ;;  %v38_v2 = vld [vmem:[%s303_s1 + $0x68] sm:$0xff] }
   0x2   :  { %50 = vmatpush.msra.mxu0 %v40_v0  ;;  %141 = vmatpush.msra.mxu2 %v40_v0  ;;  %v37_v3 = vld [vmem:[%s303_s1 + $0x60] sm:$0xff]  ;;  %v42_v4 = vld [vmem:[%s303_s1 + $0x88] sm:$0xff]  ;;  %v36_v6 = vld [vmem:[%s303_s1 + $0x58] sm:$0xff] }
   0x3   :  { %v41_v5 = vld [vmem:[%s303_s1 + $0x80] sm:$0xff]  ;;  %87 = vmatpush.msra.mxu1 %v42_v4  ;;  %v22_v7 = vld [vmem:[%s302_s0 + $0x8] sm:$0xff]  ;;  %v35_v8 = vld [vmem:[%s303_s1 + $0x50] sm:$0xff] }
   0x4   :  { %51 = vmatpush.msra.mxu0 %v39_v1  ;;  %142 = vmatpush.msra.mxu2 %v39_v1 }
   0x5   :  { %88 = vmatpush.msra.mxu1 %v41_v5 }
   0x6   :  { %52 = vmatpush.msra.mxu0 %v38_v2  ;;  %143 = vmatpush.msra.mxu2 %v38_v2 }
   0x8   :  { %53 = vmatpush.msra.mxu0 %v37_v3  ;;  %144 = vmatpush.msra.mxu2 %v37_v3 }
   0x9   :  { %10 = vsyncpa [#allocation3], 0  ;;  %v34_v9 = vld [vmem:[%s303_s1 + $0x48] sm:$0xff]  ;;  %139 = vmatmul.msk.f32.vlgmr.msra.gmra.mxu1 %vm43_vm0, %v22_v7  ;;  %v33_v10 = vld [vmem:[%s303_s1 + $0x40] sm:$0xff]  ;;  %vm118_vm2 = vcmask 261120   ;;  %s191_s19 = smov 8  }
   0xa   :  { %54 = vmatpush.msra.mxu0 %v36_v6  ;;  %145 = vmatpush.msra.mxu2 %v36_v6  ;;  %v32_v11 = vld [vmem:[%s303_s1 + $0x38] sm:$0xff]  ;;  %v31_v13 = vld [vmem:[%s303_s1 + $0x30] sm:$0xff]  ;;  %v30_v14 = vld [vmem:[%s303_s1 + $0x28] sm:$0xff] }
   0xb   :  { %v24_v12 = vld [vmem:[%s302_s0 + $0x18] sm:$0xff]  ;;  %v29_v15 = vld [vmem:[%s303_s1 + $0x20] sm:$0xff]  ;;  %v27_v17 = vld [vmem:[%s303_s1 + $0x10] sm:$0xff] }
   0xc   :  { %55 = vmatpush.msra.mxu0 %v35_v8  ;;  %146 = vmatpush.msra.mxu2 %v35_v8  ;;  %v28_v16 = vld [vmem:[%s303_s1 + $0x18] sm:$0xff]  ;;  %v26_v18 = vld [vmem:[%s303_s1 + $0x8] sm:$0xff]  ;;  %v25_v19 = vld [vmem:[%s303_s1] sm:$0xff] }
   0xd   :  { %v21_v20 = vld [vmem:[%s302_s0] sm:$0xff]  ;;  %v23_v21 = vld [vmem:[%s302_s0 + $0x10] sm:$0xff]  ;;  %s189_s0 = smov [#allocation2]  }
   0xe   :  { %56 = vmatpush.msra.mxu0 %v34_v9  ;;  %147 = vmatpush.msra.mxu2 %v34_v9  ;;  %v160_v23 = vld [vmem:[%s304_s2] ss:$0 sm:$0xff]  ;;  %s125_s2 = sshll.u32 %s189_s0, 4  ;;  %s126_s2 = int_to_ptr.vmem [resolvable:$true] %s125_s2 }
   0xf   :  { %v161_v26 = vld [vmem:[%s305_s3] ss:$0 sm:$0xff]  ;;  %s127_s3 = sshll.u32 %s307_s5, 4  ;;  %s128_s3 = int_to_ptr.hbm [resolvable:$true] %s127_s3 }
  0x10   :  { %57 = vmatpush.msra.mxu0 %v33_v10  ;;  %148 = vmatpush.msra.mxu2 %v33_v10  ;;  %v162_v28 = vld [vmem:[%s306_s4] ss:$0 sm:$0xff]  ;;  %s190_s4 = smov 128  }
  0x11   :  { %140 = vmatmul.msk.f32.gmra.mxu1 %vm43_vm0, %v24_v12 }
  0x12   :  { %58 = vmatpush.msra.mxu0 %v32_v11  ;;  %149 = vmatpush.msra.mxu2 %v32_v11 }
  0x14   :  { %59 = vmatpush.msra.mxu0 %v31_v13  ;;  %150 = vmatpush.msra.mxu2 %v31_v13 }
  0x16   :  { %60 = vmatpush.msra.mxu0 %v30_v14  ;;  %151 = vmatpush.msra.mxu2 %v30_v14 }
  0x18   :  { %61 = vmatpush.msra.mxu0 %v29_v15  ;;  %152 = vmatpush.msra.mxu2 %v29_v15 }
  0x1a   :  { %62 = vmatpush.msra.mxu0 %v28_v16  ;;  %153 = vmatpush.msra.mxu2 %v28_v16 }
  0x1c   :  { %63 = vmatpush.msra.mxu0 %v27_v17  ;;  %154 = vmatpush.msra.mxu2 %v27_v17 }
  0x1e   :  { %64 = vmatpush.msra.mxu0 %v26_v18  ;;  %155 = vmatpush.msra.mxu2 %v26_v18 }
  0x20   :  { %65 = vmatpush.msra.mxu0 %v25_v19  ;;  %156 = vmatpush.msra.mxu2 %v25_v19 }
  0x21   :  { %66 = vmatmul.f32.vlgmr.msra.gmra.mxu0 %v21_v20  ;;  %69 = vmatmul.f32.vlgmr.msra.gmra.mxu2 %v23_v21 }
  0x86   :  { %v90_v22 = vpop.f32.mrf.mxu1 }
  0x8e   :  { %v93_v29 = vpop.f32.mrf.mxu1 }
  0x9e   :  { %v67_v24 = vpop.f32.mrf.mxu0 }
  0x9f   :  { %v91_v25 = vadd.f32 %v90_v22, %v67_v24 }
  0xa1   :  { %v100_v27 = vmul.f32 %v160_v23, %v91_v25 }
  0xa3   :  { %v106_v30 = vadd.f32 %v161_v26, %v100_v27 }
  0xa4   :  { %v70_v31 = vpop.f32.mrf.mxu2 }
  0xa5   :  { %vm108_vm1 = vcmp.ge.f32.partialorder %v106_v30, 0.0  ;;  %v114_v32 = vmul.f32 %v162_v28, %v106_v30  ;;  %v94_v33 = vadd.f32 %v93_v29, %v70_v31 }
  0xa7   :  { %v116_v34 = vsel %vm108_vm1, %v106_v30, %v114_v32  ;;  %v101_v35 = vmul.f32 %v160_v23, %v94_v33 }
  0xa8   :  { %119 = vst.msk [vmem:[#allocation2] sm:$0xff] %vm118_vm2, %v116_v34 }
  0xa9   :  { %v107_v36 = vadd.f32 %v161_v26, %v101_v35 }
  0xab   :  { %vm109_vm3 = vcmp.ge.f32.partialorder %v107_v36, 0.0  ;;  %v115_v37 = vmul.f32 %v162_v28, %v107_v36 }
  0xad   :  { %v117_v38 = vsel %vm109_vm3, %v107_v36, %v115_v37 }
  0xae   :  { %120 = vst.msk [vmem:[#allocation2 + $0x8] sm:$0xff] %vm118_vm2, %v117_v38 }
  0xaf   :  { %133 = dma.vmem_to_hbm [thread:$0]  %s126_s2, 256, %s128_s3, [#allocation3], %s190_s4, %s190_s4, %s191_s19  }
  0xb0   :  { %187 = dma.done.wait [#allocation3], 256  }
  0xb1   :  { %188 = vsyncadd [#allocation3], 4294967040 }
  0xb2   :  { %138 = vsyncpa [#allocation3], 1 }

</bundles_post_ra>
